<compile_context>
chip_gen: v7x
topology: tpu7x:2x2x1
jax: 0.10.0
libtpu: 0.0.40
codegen_flags: <defaults>
</compile_context>

<pallas_src>
import functools
import math

import jax
import jax.numpy as jnp
from jax.experimental import pallas as pl
from jax.experimental.pallas import tpu as pltpu

_EPS = 1e-6
_LANE = 128


def _round_up(x, m):
    return (x + m - 1) // m * m


def _round_down(x, m):
    return x // m * m


def _conf_ce_kernel(conf_ref, out_ref, acc_ref, *, n_cols, col_block, needs_mask):
    """Accumulate lane-wide per-row partial sums of -log(conf + eps)."""
    ci = pl.program_id(1)

    @pl.when(ci == 0)
    def _init():
        acc_ref[...] = jnp.zeros_like(acc_ref)

    x = conf_ref[...].astype(jnp.float32)                  # (rb, cb)
    neg_log = -jnp.log(x + _EPS)                           # EUP transcendental
    if needs_mask:
        # Mask the ragged / over-read tail columns of boundary blocks
        # (select: garbage/NaN in the unselected branch never propagates).
        col = jax.lax.broadcasted_iota(jnp.int32, x.shape, 1) + ci * col_block
        neg_log = jnp.where(col < n_cols, neg_log, 0.0)

    cb = x.shape[1]
    if cb % _LANE == 0:
        # Pure VPU adds over static lane-aligned 128-wide slices (no XLU).
        partial = neg_log[:, 0:_LANE]
        for j in range(1, cb // _LANE):
            partial = partial + neg_log[:, j * _LANE:(j + 1) * _LANE]
        acc_ref[...] += partial
    else:
        # Full-extent ragged column block (single column step per row block):
        # one cross-lane reduce into lane 0.
        acc_ref[:, 0:1] += neg_log.sum(axis=1, keepdims=True)

    @pl.when(ci == pl.num_programs(1) - 1)
    def _finalize():
        out_ref[...] = acc_ref[...]                         # full 128-lane store


def _choose_row_split(B, n, min_cols):
    """Split each batch row into k sub-rows (free reshape) when B is small."""
    if B >= 128 or n < 2 * min_cols:
        return 1
    for k in (256, 128, 64, 32, 16, 8, 4, 2):
        if n % k == 0 and n // k >= min_cols:
            return k
    return 1


def _choose_blocks(R, C, itemsize, target_block_bytes, max_col_block):
    """Pick (rb, cb) so the input block is ~target bytes, lane-dense, and the
    row axis yields >= 2 parallel blocks when possible (v7x megacore)."""
    sub = max(8, 32 // itemsize)                     # sublane packing granule
    elems = max(_LANE * sub, target_block_bytes // itemsize)

    rb_min = R if R < sub else sub
    cb = _round_down(elems // max(rb_min, 1), _LANE)
    cb = max(_LANE, min(cb, max_col_block))
    if C <= cb:
        cb = C                                       # full extent: no column mask

    if R < sub:
        rb = R                                       # full-extent row block (legal)
    else:
        rb = max(sub, _round_down(elems // max(cb, 1), sub))
        rb = min(rb, _round_up(R, sub), 2048)
        if R >= 2 * sub:                             # >= 2 row blocks for megacore
            rb = min(rb, _round_up((R + 1) // 2, sub))
    return rb, cb


def conf_ce_loss(confidence, is_3D, *, target_block_bytes=2 << 20,
                 max_col_block=8192, min_split_cols=512):
    """Pallas TPU implementation of ConfCELoss.forward.

    confidence : (B, ...) float array (f32 or bf16)
    is_3D      : (B,) bool/int/float array
    returns    : scalar float32 loss
    """
    B = confidence.shape[0]
    n = int(math.prod(confidence.shape[1:])) if confidence.ndim > 1 else 1
    total = B * n
    itemsize = jnp.dtype(confidence.dtype).itemsize

    # Free row-major reshapes only: (B, ...) -> (B, n) -> (B*k, n//k).
    k = _choose_row_split(B, n, min_split_cols)
    R, C = B * k, n // k
    conf2d = jnp.reshape(confidence, (R, C))

    rb, cb = _choose_blocks(R, C, itemsize, target_block_bytes, max_col_block)
    grid = (pl.cdiv(R, rb), pl.cdiv(C, cb))
    needs_mask = (C % cb) != 0

    kernel = functools.partial(
        _conf_ce_kernel, n_cols=C, col_block=cb, needs_mask=needs_mask
    )

    row_sums = pl.pallas_call(
        kernel,
        out_shape=jax.ShapeDtypeStruct((R, _LANE), jnp.float32),
        grid=grid,
        in_specs=[pl.BlockSpec((rb, cb), lambda bi, ci: (bi, ci))],
        out_specs=pl.BlockSpec((rb, _LANE), lambda bi, ci: (bi, 0)),
        scratch_shapes=[pltpu.VMEM((rb, _LANE), jnp.float32)],
        compiler_params=pltpu.CompilerParams(
            dimension_semantics=("parallel", "arbitrary"),
        ),
        cost_estimate=pl.CostEstimate(
            flops=2 * total,
            transcendentals=total,
            bytes_accessed=total * itemsize + R * _LANE * 4,
        ),
    )(conf2d)

    # O(B) epilogue, fused by XLA: lane reduce, fold sub-rows back per batch,
    # is_3D weighting, and the global-mean normalization.
    per_row = row_sums.sum(axis=1)                           # (R,)
    per_batch = per_row.reshape(B, k).sum(axis=1)            # (B,)
    weighted = per_batch * is_3D.astype(jnp.float32)
    return weighted.sum() / jnp.float32(total)


def _reference(confidence, is_3D):
    return jnp.mean(
        -jnp.log(confidence.astype(jnp.float32) + _EPS)
        * is_3D[:, None, None].astype(jnp.float32)
    )


if __name__ == "__main__":
    key = jax.random.PRNGKey(0)
    k1, k2, k3 = jax.random.split(key, 3)

    # Case 1: typical small shape (B=2, 17 joints x 3 coords); single block,
    # full-extent ragged column path.
    conf1 = jax.random.uniform(k1, (2, 17, 3), jnp.float32, minval=0.05, maxval=1.0)
    is3d1 = jnp.array([1.0, 0.0], dtype=jnp.float32)
    out1 = jax.block_until_ready(conf_ce_loss(conf1, is3d1))
    ref1 = _reference(conf1, is3d1)
    assert jnp.allclose(out1, ref1, rtol=1e-5, atol=1e-6), (out1, ref1)

    # Case 2: row-split path (B=3, n=24*56=1344 -> k=2 sub-rows per batch).
    conf2 = jax.random.uniform(k2, (3, 24, 56), jnp.float32, minval=0.01, maxval=1.0)
    is3d2 = jnp.array([1.0, 1.0, 0.0], dtype=jnp.float32)
    out2 = jax.block_until_ready(conf_ce_loss(conf2, is3d2))
    ref2 = _reference(conf2, is3d2)
    assert jnp.allclose(out2, ref2, rtol=1e-5, atol=1e-6), (out2, ref2)

    # Case 3: multi-step column reduction + ragged last column tile + in-kernel
    # mask (small max_col_block forces the accumulator path at a tiny shape).
    conf3 = jax.random.uniform(k3, (3, 10, 70), jnp.float32, minval=0.01, maxval=1.0)
    is3d3 = jnp.array([0.0, 1.0, 1.0], dtype=jnp.float32)
    out3 = jax.block_until_ready(conf_ce_loss(conf3, is3d3, max_col_block=128))
    ref3 = _reference(conf3, is3d3)
    assert jnp.allclose(out3, ref3, rtol=1e-5, atol=1e-6), (out3, ref3)

    print("KERNEL_OK")
</pallas_src>

<mosaic_0001>
module attributes {stable_mosaic.version = 11 : i64} {
  func.func @_conf_ce_kernel(%arg0: i32, %arg1: i32, %arg2: memref<2x51xf32, #tpu.memory_space<vmem>>, %arg3: memref<2x128xf32, #tpu.memory_space<vmem>>, %arg4: memref<2x128xf32, #tpu.memory_space<vmem>>) attributes {dimension_semantics = [#tpu.dimension_semantics<parallel>, #tpu.dimension_semantics<arbitrary>], iteration_bounds = array<i64: 1, 1>, scalar_prefetch = 0 : i64, scratch_operands = 1 : i64, tpu.core_type = #tpu.core_type<tc>, window_params = [{transform_indices = @transform_0, window_bounds = array<i64: 2, 51>}, {transform_indices = @transform_1, window_bounds = array<i64: 2, 128>}]} {
    %c0_i32 = arith.constant 0 : i32
    %0 = arith.cmpi eq, %arg1, %c0_i32 : i32
    %1 = arith.extui %0 : i1 to i32
    %c0_i32_0 = arith.constant 0 : i32
    %2 = arith.cmpi ne, %1, %c0_i32_0 : i32
    scf.if %2 {
      %cst_10 = arith.constant 0.000000e+00 : f32
      %17 = vector.broadcast %cst_10 : f32 to vector<2x128xf32>
      %c0_11 = arith.constant 0 : index
      %c0_12 = arith.constant 0 : index
      %18 = vector.load %arg4[%c0_11, %c0_12] : memref<2x128xf32, #tpu.memory_space<vmem>>, vector<2x128xf32>
      tpu.vector_store %arg4[%c0_11, %c0_12], %17 {strides = array<i32>} : memref<2x128xf32, #tpu.memory_space<vmem>>, vector<2x128xf32>,
    } else {
    }
    %c0 = arith.constant 0 : index
    %c0_1 = arith.constant 0 : index
    %3 = vector.load %arg2[%c0, %c0_1] : memref<2x51xf32, #tpu.memory_space<vmem>>, vector<2x51xf32>
    %cst = arith.constant 9.99999997E-7 : f32
    %4 = vector.broadcast %cst : f32 to vector<2x51xf32>
    %5 = arith.addf %3, %4 : vector<2x51xf32>
    %6 = math.log %5 : vector<2x51xf32>
    %cst_2 = arith.constant 0.000000e+00 : f32
    %7 = vector.broadcast %cst_2 : f32 to vector<2x51xf32>
    %8 = arith.subf %7, %6 : vector<2x51xf32>
    %c0_3 = arith.constant 0 : index
    %c0_4 = arith.constant 0 : index
    %9 = vector.load %arg4[%c0_3, %c0_4] : memref<2x128xf32, #tpu.memory_space<vmem>>, vector<2x1xf32>
    %cst_5 = arith.constant dense<0.000000e+00> : vector<2xf32>
    %10 = vector.multi_reduction <add>, %8, %cst_5 [1] : vector<2x51xf32> to vector<2xf32>
    %11 = vector.shape_cast %10 : vector<2xf32> to vector<2x1xf32>
    %12 = arith.addf %9, %11 : vector<2x1xf32>
    %c0_6 = arith.constant 0 : index
    %c0_7 = arith.constant 0 : index
    %13 = vector.load %arg4[%c0_6, %c0_7] : memref<2x128xf32, #tpu.memory_space<vmem>>, vector<2x1xf32>
    tpu.vector_store %arg4[%c0_6, %c0_7], %12 {strides = array<i32>} : memref<2x128xf32, #tpu.memory_space<vmem>>, vector<2x1xf32>,
    %c0_i32_8 = arith.constant 0 : i32
    %14 = arith.cmpi eq, %arg1, %c0_i32_8 : i32
    %15 = arith.extui %14 : i1 to i32
    %c0_i32_9 = arith.constant 0 : i32
    %16 = arith.cmpi ne, %15, %c0_i32_9 : i32
    scf.if %16 {
      %c0_10 = arith.constant 0 : index
      %c0_11 = arith.constant 0 : index
      %17 = vector.load %arg4[%c0_10, %c0_11] : memref<2x128xf32, #tpu.memory_space<vmem>>, vector<2x128xf32>
      %c0_12 = arith.constant 0 : index
      %c0_13 = arith.constant 0 : index
      %18 = vector.load %arg3[%c0_12, %c0_13] : memref<2x128xf32, #tpu.memory_space<vmem>>, vector<2x128xf32>
      tpu.vector_store %arg3[%c0_12, %c0_13], %17 {strides = array<i32>} : memref<2x128xf32, #tpu.memory_space<vmem>>, vector<2x128xf32>,
    } else {
    }
    return
  }
  func.func @transform_0(%arg0: i32, %arg1: i32) -> (i32, i32) {
    %c0_i32 = arith.constant 0 : i32
    return %arg0, %arg1 : i32, i32
  }
  func.func @transform_1(%arg0: i32, %arg1: i32) -> (i32, i32) {
    %c0_i32 = arith.constant 0 : i32
    %c0_i32_0 = arith.constant 0 : i32
    return %arg0, %c0_i32 : i32, i32
  }
}

</mosaic_0001>

<bundles_post_ra>
// kernel: tpu_custom_call.1
= control target key start
LH: loop header
LB: loop body
LE: loop exit
PB: predicated region body
PF: predicated region fallthrough
CT: control target
= control target key end

     0   :  { %6 = vsyncpa [#allocation4], 0  ;;  %s149_s0 = inlined_call_operand.hbm [shape: f32[2,51], index: 0, kind: input, shape index: {}]   ;;  %s150_s1 = inlined_call_operand.hbm [shape: f32[2,128], index: 1, kind: output, shape index: {}]  }
   0x1   :  { %7 = vsyncpa [#allocation5], 0  ;;  %s112_s6 = smov [#allocation3]   ;;  %s64_s10 = scalar_lea.hbm %s149_s0, 32 }
   0x2   :  { %s14_s7 = sshll.u32 %s112_s6, 4  ;;  %p65_p0 = scmp.ne.s32.totalorder %s149_s0, %s64_s10  ;;  %s15_s7 = int_to_ptr.vmem [resolvable:$true] %s14_s7 }
   0x3   :  { %p68_p1 = scmp.lt.u32.totalorder %s64_s10, %s149_s0 }
   0x5   :  { %p70_p2 = pnand %p68_p1, %p65_p0 }
   0x7   :  { %73 = shalt.err (!%p70_p2)
}
   0x8   :  { %s74_s15 = scalar_lea.vmem %s15_s7, 32  ;;  %p79_p4 = scmp.lt.s32.totalorder %s15_s7, %s15_s7 }
   0x9   :  { %p75_p3 = scmp.ne.s32.totalorder %s15_s7, %s74_s15  ;;  %p80_p5 = scmp.lt.s32.totalorder %s74_s15, %s74_s15 }
   0xb   :  { %p81_p6 = por %p80_p5, %p79_p4 }
   0xd   :  { %p82_p7 = pnand %p81_p6, %p75_p3 }
   0xf   :  { %85 = shalt.err (!%p82_p7)
}
  0x10   :  { %17 = dma.hbm_to_vmem [thread:$0]  %s149_s0, 32, %s15_s7, [#allocation4]  }
  0x11   :  { %108 = dma.done.wait [#allocation4], 32  }
  0x12   :  { %109 = vsyncadd [#allocation4], 4294967264  ;;  %v113_v0 = vmov 0.0   ;;  %v26_v1 = vld [vmem:[#allocation3] sm:$0x3]  ;;  %vm32_vm0 = vcmask 410624  }
  0x13   :  { %25 = vst [vmem:[#allocation2] sm:$0x3] %v113_v0  ;;  %v27_v2 = vadd.f32 1e-06, %v26_v1  ;;  %vm37_vm1 = vcmask 1024   ;;  %s114_s18 = smov [#allocation6]  }
  0x14   :  { %s50_s0 = sshll.u32 %s114_s18, 4  ;;  %s51_s0 = int_to_ptr.vmem [resolvable:$true] %s50_s0 }
  0x15   :  { %62 = vlog2.f32 %v27_v2  ;;  %s86_s19 = scalar_lea.vmem %s51_s0, 32  ;;  %p91_p9 = scmp.lt.s32.totalorder %s51_s0, %s51_s0 }
  0x16   :  { %p87_p8 = scmp.ne.s32.totalorder %s51_s0, %s86_s19  ;;  %p92_p10 = scmp.lt.s32.totalorder %s86_s19, %s86_s19 }
  0x18   :  { %p93_p11 = por %p92_p10, %p91_p9 }
  0x1a   :  { %v31_v7 = vld [vmem:[#allocation2] sm:$0x3]  ;;  %p94_p12 = pnand %p93_p11, %p87_p8 }
  0x1f   :  { %v63_v3 = vpop.eup %62 }
  0x20   :  { %v29_v4 = vmul.f32 0.6931472, %v63_v3 }
  0x22   :  { %v30_v5 = vsub.f32 0.0, %v29_v4 }
  0x24   :  { %v33_v6 = vsel %vm32_vm0, %v30_v5, 0.0 }
  0x25   :  { %34 = vadd.xlane.f32.xlu0 %v33_v6 }
  0xb2   :  { %v35_v8 = vpop.xlane.xlu0 %34 }
  0xb3   :  { %v36_v9 = vadd.f32 %v35_v8, %v31_v7 }
  0xb5   :  { %38 = vst.msk [vmem:[#allocation2] sm:$0x3] %vm37_vm1, %v36_v9 }
  0xbc   :  { %v42_v10 = vld [vmem:[#allocation2] sm:$0x3] }
  0xbd   :  { %43 = vst [vmem:[#allocation6] sm:$0x3] %v42_v10 }
  0xbe   :  { %97 = shalt.err (!%p94_p12)
}
  0xbf   :  { %s98_s22 = scalar_lea.hbm %s150_s1, 32 }
  0xc0   :  { %p99_p13 = scmp.ne.s32.totalorder %s150_s1, %s98_s22  ;;  %p102_p0 = scmp.lt.u32.totalorder %s98_s22, %s150_s1 }
  0xc2   :  { %p104_p1 = pnand %p102_p0, %p99_p13 }
  0xc4   :  { %107 = shalt.err (!%p104_p1)
}
  0xc5   :  { %53 = dma.vmem_to_hbm [thread:$0]  %s51_s0, 32, %s150_s1, [#allocation5]  }
  0xc6   :  { %110 = dma.done.wait [#allocation5], 32  }
  0xc7   :  { %111 = vsyncadd [#allocation5], 4294967264 }
  0xc8   :  { %57 = vsyncpa [#allocation4], 1 }
  0xc9   :  { %58 = vsyncpa [#allocation5], 1 }

</bundles_post_ra>
